<compile_context>
chip_gen: v7x
topology: tpu7x:2x2x1
jax: 0.10.0
libtpu: 0.0.40
codegen_flags: <defaults>
</compile_context>

<pallas_src>
import jax
import jax.numpy as jnp
import numpy as np
from jax.experimental import pallas as pl
from jax.experimental.pallas import tpu as pltpu

BN_EPS = 1e-5
LEAKY_SLOPE = 0.01          # F.leaky_relu default negative_slope
LANE = 128                  # TPU lane width
NEG_BIG = -1e30             # bias for padded (fake) classes -> exp() underflows to 0
VMEM_LIMIT = 32 * 1024 * 1024   # safe on v5e/v6e (128 MiB phys) and v7x (64 MiB phys)


# ---------------------------------------------------------------------------
# Kernels
# ---------------------------------------------------------------------------
def gin_layer_kernel(a_ref, x_ref, w_ref, b_ref, scale_ref, shift_ref,
                     out_ref, acc_ref):
    """One GIN layer: agg = A' @ X (tiled over K), then Linear+ReLU+BN+leaky_relu."""
    k = pl.program_id(1)

    @pl.when(k == 0)
    def _():
        acc_ref[...] = jnp.zeros_like(acc_ref)

    # bf16 MXU matmul, f32 accumulation in VMEM scratch.
    acc_ref[...] += jnp.dot(a_ref[...], x_ref[...],
                            preferred_element_type=jnp.float32)

    @pl.when(k == pl.num_programs(1) - 1)
    def _():
        h = acc_ref[...].astype(jnp.bfloat16)
        z = jnp.dot(h, w_ref[...], preferred_element_type=jnp.float32) + b_ref[...]
        z = jnp.maximum(z, 0.0)                       # ReLU
        z = z * scale_ref[...] + shift_ref[...]       # BatchNorm1d folded to affine
        z = jnp.where(z > 0, z, LEAKY_SLOPE * z)      # outer leaky_relu
        out_ref[...] = z.astype(out_ref.dtype)


def head_kernel(x_ref, w_ref, b_ref, out_ref):
    """lin2 + log_softmax over a lane-dense (128-padded) class axis."""
    logits = jnp.dot(x_ref[...], w_ref[...],
                     preferred_element_type=jnp.float32) + b_ref[...]
    m = jnp.max(logits, axis=-1, keepdims=True)
    s = logits - m
    lse = jnp.log(jnp.sum(jnp.exp(s), axis=-1, keepdims=True))
    out_ref[...] = s - lse


# ---------------------------------------------------------------------------
# Pallas wrappers
# ---------------------------------------------------------------------------
def _tile(n, want):
    """Largest of `want`/`n` that divides n (falls back to whole extent)."""
    want = min(want, n)
    return want if n % want == 0 else n


def gin_layer(adj_eps, x, w, b, scale, shift, *, tm=256, tk=512):
    """adj_eps: (N,N) bf16 with (1+eps)I folded in; x: (N,Fp) bf16; w: (Fp,Hp) bf16."""
    n = x.shape[0]
    fp = x.shape[1]
    hp = w.shape[1]
    tm = _tile(n, tm)
    tk = _tile(n, tk)
    grid = (n // tm, n // tk)

    return pl.pallas_call(
        gin_layer_kernel,
        out_shape=jax.ShapeDtypeStruct((n, hp), jnp.bfloat16),
        grid_spec=pltpu.PrefetchScalarGridSpec(
            num_scalar_prefetch=0,
            grid=grid,
            in_specs=[
                pl.BlockSpec((tm, tk), lambda i, k: (i, k)),    # A' tile (dst, src)
                pl.BlockSpec((tk, fp), lambda i, k: (k, 0)),    # X rows of src tile
                pl.BlockSpec((fp, hp), lambda i, k: (0, 0)),    # Linear weight
                pl.BlockSpec((1, hp), lambda i, k: (0, 0)),     # Linear bias
                pl.BlockSpec((1, hp), lambda i, k: (0, 0)),     # BN scale
                pl.BlockSpec((1, hp), lambda i, k: (0, 0)),     # BN shift
            ],
            out_specs=pl.BlockSpec((tm, hp), lambda i, k: (i, 0)),
            scratch_shapes=[pltpu.VMEM((tm, fp), jnp.float32)],
        ),
        compiler_params=pltpu.CompilerParams(
            dimension_semantics=("parallel", "arbitrary"),
            vmem_limit_bytes=VMEM_LIMIT,
        ),
        cost_estimate=pl.CostEstimate(
            flops=2 * n * n * fp + 2 * n * fp * hp,
            transcendentals=0,
            bytes_accessed=n * n * 2 + n * fp * 2 + fp * hp * 2 + n * hp * 2),
    )(adj_eps, x, w, b, scale, shift)


def gin_head(x_cat, w2, b2, *, tm=256):
    """x_cat: (N, Ctot) bf16; w2: (Ctot, Cp) bf16; b2: (1, Cp) f32 (padded with -1e30)."""
    n, ctot = x_cat.shape
    cp = w2.shape[1]
    tm = _tile(n, tm)
    grid = (n // tm,)

    return pl.pallas_call(
        head_kernel,
        out_shape=jax.ShapeDtypeStruct((n, cp), jnp.float32),
        grid_spec=pltpu.PrefetchScalarGridSpec(
            num_scalar_prefetch=0,
            grid=grid,
            in_specs=[
                pl.BlockSpec((tm, ctot), lambda i: (i, 0)),
                pl.BlockSpec((ctot, cp), lambda i: (0, 0)),
                pl.BlockSpec((1, cp), lambda i: (0, 0)),
            ],
            out_specs=pl.BlockSpec((tm, cp), lambda i: (i, 0)),
        ),
        compiler_params=pltpu.CompilerParams(
            dimension_semantics=("parallel",),
            vmem_limit_bytes=VMEM_LIMIT,
        ),
        cost_estimate=pl.CostEstimate(
            flops=2 * n * ctot * cp,
            transcendentals=n * cp,
            bytes_accessed=n * ctot * 2 + ctot * cp * 2 + cp * 4 + n * cp * 4),
    )(x_cat, w2, b2)


def gin_forward(prep, *, tm=256, tk=512):
    """agg='concat' variant: concat per-layer outputs before the classifier.

    NOTE: layers cannot be fused into one row-tiled kernel because layer L+1's
    aggregation of ANY row tile needs ALL rows of layer L's output; each layer is
    therefore one fully fused pallas_call and only a cheap concat copy remains.
    """
    h = prep["x"]
    cols = []
    for layer in prep["layers"]:
        h = gin_layer(layer["adj_eps"], h, layer["w"], layer["b"],
                      layer["scale"], layer["shift"], tm=tm, tk=tk)
        cols.append(h)
    x_cat = jnp.concatenate(cols, axis=1)                       # agg == 'concat'
    logp = gin_head(x_cat, prep["w2"], prep["b2"], tm=tm)
    return logp[:, :prep["num_class"]]


# ---------------------------------------------------------------------------
# Host-side parameter preprocessing (fold eps into A, fold BN, pad to 128 lanes)
# ---------------------------------------------------------------------------
def _pad_to(v, m):
    return ((v + m - 1) // m) * m


def prepare_inputs(x, adj, params, num_class):
    n, f = x.shape
    fp = _pad_to(f, LANE)
    x_p = jnp.pad(x, ((0, 0), (0, fp - f))).astype(jnp.bfloat16)

    eye = jnp.eye(n, dtype=jnp.float32)
    layers_prep, col_blocks = [], []
    in_dim_p, total = fp, 0
    for layer in params["layers"]:
        fin, fout = layer["w"].shape
        fout_p = _pad_to(fout, LANE)
        # Fold (1 + eps) * I into the adjacency -> single MXU op per aggregation.
        adj_eps = (adj + (1.0 + layer["eps"]) * eye).astype(jnp.bfloat16)
        w_p = jnp.pad(layer["w"], ((0, in_dim_p - fin), (0, fout_p - fout))
                      ).astype(jnp.bfloat16)
        b_p = jnp.pad(layer["b"], (0, fout_p - fout)).reshape(1, -1).astype(jnp.float32)
        # BatchNorm1d (eval) folded into one per-channel affine.
        scale = layer["gamma"] * jax.lax.rsqrt(layer["var"] + BN_EPS)
        shift = layer["beta"] - layer["mean"] * scale
        scale_p = jnp.pad(scale, (0, fout_p - fout), constant_values=1.0
                          ).reshape(1, -1).astype(jnp.float32)
        shift_p = jnp.pad(shift, (0, fout_p - fout)).reshape(1, -1).astype(jnp.float32)
        layers_prep.append(dict(adj_eps=adj_eps, w=w_p, b=b_p,
                                scale=scale_p, shift=shift_p))
        col_blocks.append((total, fout))
        total += fout_p
        in_dim_p = fout_p

    # Classifier: scatter the real w2 rows into the padded concat layout,
    # pad the class axis to 128 lanes with zero weights and -1e30 bias.
    cp = _pad_to(num_class, LANE)
    w2_p = jnp.zeros((total, cp), jnp.float32)
    r = 0
    for off, fout in col_blocks:
        w2_p = w2_p.at[off:off + fout, :num_class].set(params["w2"][r:r + fout])
        r += fout
    w2_p = w2_p.astype(jnp.bfloat16)
    b2_p = jnp.concatenate(
        [params["b2"].astype(jnp.float32),
         jnp.full((cp - num_class,), NEG_BIG, jnp.float32)]).reshape(1, -1)

    return dict(x=x_p, layers=layers_prep, w2=w2_p, b2=b2_p, num_class=num_class)


# ---------------------------------------------------------------------------
# Pure-JAX reference on the SAME preprocessed (bf16, padded) params.
# Differences vs the kernel are only f32 accumulation order (+ occasional
# bf16-ulp flips on intermediates), hence the modest tolerance below.
# ---------------------------------------------------------------------------
def gin_forward_ref(prep):
    h = prep["x"]
    cols = []
    for layer in prep["layers"]:
        agg = jnp.dot(layer["adj_eps"], h, preferred_element_type=jnp.float32)
        z = jnp.dot(agg.astype(jnp.bfloat16), layer["w"],
                    preferred_element_type=jnp.float32) + layer["b"]
        z = jnp.maximum(z, 0.0)
        z = z * layer["scale"] + layer["shift"]
        h = jnp.where(z > 0, z, LEAKY_SLOPE * z).astype(jnp.bfloat16)
        cols.append(h)
    x_cat = jnp.concatenate(cols, axis=1)
    logits = jnp.dot(x_cat, prep["w2"],
                     preferred_element_type=jnp.float32) + prep["b2"]
    return jax.nn.log_softmax(logits, axis=-1)[:, :prep["num_class"]]


# ---------------------------------------------------------------------------
# Main
# ---------------------------------------------------------------------------
if __name__ == "__main__":
    # Small shapes consistent with the module defaults; N chosen so the
    # (row-tile, src-tile) grid actually exercises the accumulator pipeline.
    N = 256            # number of graph nodes
    E = 1024           # number of edges
    FEATURES = 32      # args['features_num']
    HIDDEN = 64        # args['hidden']
    HIDDEN2 = 32       # args['hidden2']
    NUM_CLASS = 8      # args['num_class']
    NUM_LAYERS = 2     # args['num_layers'] -> conv1 + 1 extra GINConv

    key = jax.random.PRNGKey(0)
    keys = jax.random.split(key, 12)

    # Node features and random edge_index [2, E]; dense adjacency (glue, not kernel).
    x = jax.random.normal(keys[0], (N, FEATURES), jnp.float32)
    src = jax.random.randint(keys[1], (E,), 0, N)
    dst = jax.random.randint(keys[2], (E,), 0, N)
    adj = jnp.zeros((N, N), jnp.float32).at[dst, src].add(1.0)

    def make_layer(k, fin, fout):
        kw, kb = jax.random.split(k)
        return {
            "eps": jnp.asarray(0.0, jnp.float32),                # GINConv(train_eps=True) init
            "w": jax.random.normal(kw, (fin, fout), jnp.float32) * 0.1,
            "b": jax.random.normal(kb, (fout,), jnp.float32) * 0.1,
            "gamma": jnp.ones((fout,), jnp.float32),             # BatchNorm1d defaults
            "beta": jnp.zeros((fout,), jnp.float32),
            "mean": jnp.zeros((fout,), jnp.float32),
            "var": jnp.ones((fout,), jnp.float32),
        }

    layers = [make_layer(keys[3], FEATURES, HIDDEN)]
    for i in range(NUM_LAYERS - 1):
        layers.append(make_layer(keys[4 + i], HIDDEN, HIDDEN2))

    outdim = HIDDEN + (NUM_LAYERS - 1) * HIDDEN2                 # agg == 'concat'
    params = {
        "layers": layers,
        "w2": jax.random.normal(keys[10], (outdim, NUM_CLASS), jnp.float32) * 0.1,
        "b2": jax.random.normal(keys[11], (NUM_CLASS,), jnp.float32) * 0.1,
    }

    prep = prepare_inputs(x, adj, params, NUM_CLASS)

    # tm/tk = 128 here so the 256-node demo runs a real (2, 2) grid with the
    # K-axis accumulator; defaults (256, 512) are sized for v7x's 64 MiB VMEM.
    out = gin_forward(prep, tm=128, tk=128)
    out = jax.block_until_ready(out)

    ref = gin_forward_ref(prep)
    np.testing.assert_allclose(np.asarray(out), np.asarray(ref),
                               rtol=5e-2, atol=5e-2)

    print("KERNEL_OK")
</pallas_src>

<mosaic_0001>
module attributes {stable_mosaic.version = 11 : i64} {
  func.func @gin_layer_kernel(%arg0: i32, %arg1: i32, %arg2: memref<128x128xbf16, #tpu.memory_space<vmem>>, %arg3: memref<128x128xbf16, #tpu.memory_space<vmem>>, %arg4: memref<128x128xbf16, #tpu.memory_space<vmem>>, %arg5: memref<1x128xf32, #tpu.memory_space<vmem>>, %arg6: memref<1x128xf32, #tpu.memory_space<vmem>>, %arg7: memref<1x128xf32, #tpu.memory_space<vmem>>, %arg8: memref<128x128xbf16, #tpu.memory_space<vmem>>, %arg9: memref<128x128xf32, #tpu.memory_space<vmem>>) attributes {dimension_semantics = [#tpu.dimension_semantics<parallel>, #tpu.dimension_semantics<arbitrary>], iteration_bounds = array<i64: 2, 2>, scalar_prefetch = 0 : i64, scratch_operands = 1 : i64, tpu.core_type = #tpu.core_type<tc>, window_params = [{transform_indices = @transform_0, window_bounds = array<i64: 128, 128>}, {transform_indices = @transform_1, window_bounds = array<i64: 128, 128>}, {pipeline_mode = #tpu.pipeline_mode<synchronous>, transform_indices = @transform_2, window_bounds = array<i64: 128, 128>}, {pipeline_mode = #tpu.pipeline_mode<synchronous>, transform_indices = @transform_3, window_bounds = array<i64: 1, 128>}, {pipeline_mode = #tpu.pipeline_mode<synchronous>, transform_indices = @transform_4, window_bounds = array<i64: 1, 128>}, {pipeline_mode = #tpu.pipeline_mode<synchronous>, transform_indices = @transform_5, window_bounds = array<i64: 1, 128>}, {transform_indices = @transform_6, window_bounds = array<i64: 128, 128>}]} {
    %c0_i32 = arith.constant 0 : i32
    %0 = arith.cmpi eq, %arg1, %c0_i32 : i32
    %1 = arith.extui %0 : i1 to i32
    %c0_i32_0 = arith.constant 0 : i32
    %2 = arith.cmpi ne, %1, %c0_i32_0 : i32
    scf.if %2 {
      %cst_9 = arith.constant 0.000000e+00 : f32
      %12 = vector.broadcast %cst_9 : f32 to vector<128x128xf32>
      %c0_10 = arith.constant 0 : index
      %c0_11 = arith.constant 0 : index
      %13 = vector.load %arg9[%c0_10, %c0_11] : memref<128x128xf32, #tpu.memory_space<vmem>>, vector<128x128xf32>
      tpu.vector_store %arg9[%c0_10, %c0_11], %12 {strides = array<i32>} : memref<128x128xf32, #tpu.memory_space<vmem>>, vector<128x128xf32>,
    } else {
    }
    %c0 = arith.constant 0 : index
    %c0_1 = arith.constant 0 : index
    %3 = vector.load %arg9[%c0, %c0_1] : memref<128x128xf32, #tpu.memory_space<vmem>>, vector<128x128xf32>
    %c0_2 = arith.constant 0 : index
    %c0_3 = arith.constant 0 : index
    %4 = vector.load %arg2[%c0_2, %c0_3] : memref<128x128xbf16, #tpu.memory_space<vmem>>, vector<128x128xbf16>
    %c0_4 = arith.constant 0 : index
    %c0_5 = arith.constant 0 : index
    %5 = vector.load %arg3[%c0_4, %c0_5] : memref<128x128xbf16, #tpu.memory_space<vmem>>, vector<128x128xbf16>
    %cst = arith.constant dense<0.000000e+00> : vector<128x128xf32>
    %6 = tpu.matmul %4, %5, %cst {dimension_numbers = #tpu.dot_dimension_numbers<[1], [0], [0], [1], [0, 0, 1, 1], [], []>} : vector<128x128xbf16>, vector<128x128xbf16>, vector<128x128xf32> -> vector<128x128xf32>
    %7 = arith.addf %3, %6 : vector<128x128xf32>
    %c0_6 = arith.constant 0 : index
    %c0_7 = arith.constant 0 : index
    %8 = vector.load %arg9[%c0_6, %c0_7] : memref<128x128xf32, #tpu.memory_space<vmem>>, vector<128x128xf32>
    tpu.vector_store %arg9[%c0_6, %c0_7], %7 {strides = array<i32>} : memref<128x128xf32, #tpu.memory_space<vmem>>, vector<128x128xf32>,
    %c1_i32 = arith.constant 1 : i32
    %9 = arith.cmpi eq, %arg1, %c1_i32 : i32
    %10 = arith.extui %9 : i1 to i32
    %c0_i32_8 = arith.constant 0 : i32
    %11 = arith.cmpi ne, %10, %c0_i32_8 : i32
    scf.if %11 {
      %c0_9 = arith.constant 0 : index
      %c0_10 = arith.constant 0 : index
      %12 = vector.load %arg9[%c0_9, %c0_10] : memref<128x128xf32, #tpu.memory_space<vmem>>, vector<128x128xf32>
      %13 = arith.truncf %12 : vector<128x128xf32> to vector<128x128xbf16>
      %c0_11 = arith.constant 0 : index
      %c0_12 = arith.constant 0 : index
      %14 = vector.load %arg4[%c0_11, %c0_12] : memref<128x128xbf16, #tpu.memory_space<vmem>>, vector<128x128xbf16>
      %cst_13 = arith.constant dense<0.000000e+00> : vector<128x128xf32>
      %15 = tpu.matmul %13, %14, %cst_13 {dimension_numbers = #tpu.dot_dimension_numbers<[1], [0], [0], [1], [0, 0, 1, 1], [], []>} : vector<128x128xbf16>, vector<128x128xbf16>, vector<128x128xf32> -> vector<128x128xf32>
      %c0_14 = arith.constant 0 : index
      %c0_15 = arith.constant 0 : index
      %16 = vector.load %arg5[%c0_14, %c0_15] : memref<1x128xf32, #tpu.memory_space<vmem>>, vector<1x128xf32>
      %17 = vector.broadcast %16 : vector<1x128xf32> to vector<128x128xf32>
      %18 = arith.addf %15, %17 : vector<128x128xf32>
      %cst_16 = arith.constant 0.000000e+00 : f32
      %19 = vector.broadcast %cst_16 : f32 to vector<128x128xf32>
      %20 = arith.maximumf %18, %19 : vector<128x128xf32>
      %c0_17 = arith.constant 0 : index
      %c0_18 = arith.constant 0 : index
      %21 = vector.load %arg6[%c0_17, %c0_18] : memref<1x128xf32, #tpu.memory_space<vmem>>, vector<1x128xf32>
      %22 = vector.broadcast %21 : vector<1x128xf32> to vector<128x128xf32>
      %23 = arith.mulf %20, %22 : vector<128x128xf32>
      %c0_19 = arith.constant 0 : index
      %c0_20 = arith.constant 0 : index
      %24 = vector.load %arg7[%c0_19, %c0_20] : memref<1x128xf32, #tpu.memory_space<vmem>>, vector<1x128xf32>
      %25 = vector.broadcast %24 : vector<1x128xf32> to vector<128x128xf32>
      %26 = arith.addf %23, %25 : vector<128x128xf32>
      %cst_21 = arith.constant 0.000000e+00 : f32
      %27 = vector.broadcast %cst_21 : f32 to vector<128x128xf32>
      %28 = arith.cmpf ogt, %26, %27 : vector<128x128xf32>
      %cst_22 = arith.constant 0.00999999977 : f32
      %29 = vector.broadcast %cst_22 : f32 to vector<128x128xf32>
      %30 = arith.mulf %29, %26 : vector<128x128xf32>
      %31 = arith.select %28, %26, %30 : vector<128x128xi1>, vector<128x128xf32>
      %32 = arith.truncf %31 : vector<128x128xf32> to vector<128x128xbf16>
      %c0_23 = arith.constant 0 : index
      %c0_24 = arith.constant 0 : index
      %33 = vector.load %arg8[%c0_23, %c0_24] : memref<128x128xbf16, #tpu.memory_space<vmem>>, vector<128x128xbf16>
      tpu.vector_store %arg8[%c0_23, %c0_24], %32 {strides = array<i32>} : memref<128x128xbf16, #tpu.memory_space<vmem>>, vector<128x128xbf16>,
    } else {
    }
    return
  }
  func.func @transform_0(%arg0: i32, %arg1: i32) -> (i32, i32) {
    %c0_i32 = arith.constant 0 : i32
    return %arg0, %arg1 : i32, i32
  }
  func.func @transform_1(%arg0: i32, %arg1: i32) -> (i32, i32) {
    %c0_i32 = arith.constant 0 : i32
    %c0_i32_0 = arith.constant 0 : i32
    return %arg1, %c0_i32 : i32, i32
  }
  func.func @transform_2(%arg0: i32, %arg1: i32) -> (i32, i32) {
    %c0_i32 = arith.constant 0 : i32
    %c0_i32_0 = arith.constant 0 : i32
    %c0_i32_1 = arith.constant 0 : i32
    return %c0_i32, %c0_i32_0 : i32, i32
  }
  func.func @transform_3(%arg0: i32, %arg1: i32) -> (i32, i32) {
    %c0_i32 = arith.constant 0 : i32
    %c0_i32_0 = arith.constant 0 : i32
    %c0_i32_1 = arith.constant 0 : i32
    return %c0_i32, %c0_i32_0 : i32, i32
  }
  func.func @transform_4(%arg0: i32, %arg1: i32) -> (i32, i32) {
    %c0_i32 = arith.constant 0 : i32
    %c0_i32_0 = arith.constant 0 : i32
    %c0_i32_1 = arith.constant 0 : i32
    return %c0_i32, %c0_i32_0 : i32, i32
  }
  func.func @transform_5(%arg0: i32, %arg1: i32) -> (i32, i32) {
    %c0_i32 = arith.constant 0 : i32
    %c0_i32_0 = arith.constant 0 : i32
    %c0_i32_1 = arith.constant 0 : i32
    return %c0_i32, %c0_i32_0 : i32, i32
  }
  func.func @transform_6(%arg0: i32, %arg1: i32) -> (i32, i32) {
    %c0_i32 = arith.constant 0 : i32
    %c0_i32_0 = arith.constant 0 : i32
    return %arg0, %c0_i32 : i32, i32
  }
}

</mosaic_0001>

<bundles_post_ra>
// kernel: tpu_custom_call.1
= control target key start
LH: loop header
LB: loop body
LE: loop exit
PB: predicated region body
PF: predicated region fallthrough
CT: control target
= control target key end

     0   :  { %s2352_s0 = inlined_call_operand.hbm [shape: bf16[256,256], index: 0, kind: input, shape index: {}]   ;;  %s2353_s1 = inlined_call_operand.hbm [shape: bf16[256,128], index: 1, kind: input, shape index: {}]   ;;  %s2354_s2 = inlined_call_operand.hbm [shape: bf16[128,128], index: 2, kind: input, shape index: {}]   ;;  %s2355_s3 = inlined_call_operand.vmem [shape: f32[1,128], index: 3, kind: input, shape index: {}]   ;;  %s2356_s4 = inlined_call_operand.vmem [shape: f32[1,128], index: 4, kind: input, shape index: {}]   ;;  %s2357_s5 = inlined_call_operand.vmem [shape: f32[1,128], index: 5, kind: input, shape index: {}]   ;;  %s2358_s6 = inlined_call_operand.hbm [shape: bf16[256,128], index: 6, kind: output, shape index: {}]  }
   0x1   :  { %2382 = sst [smem:[#allocation23_spill]] %s2354_s2 }
   0x2   :  { %2383 = sst [smem:[#allocation24_spill]] %s2355_s3 }
   0x3   :  { %2384 = sst [smem:[#allocation25_spill]] %s2356_s4 }
   0x4   :  { %2385 = sst [smem:[#allocation26_spill]] %s2357_s5 }
   0x5   :  { %2386 = sst [smem:[#allocation27_spill]] %s2358_s6 }
   0x6   :  { %11 = vsyncpa [#allocation4], 0 }
   0x7   :  { %13 = vsyncpa [#allocation4 + $0x1], 0 }
   0x8   :  { %14 = vsyncpa [#allocation7], 0 }
   0x9   :  { %16 = vsyncpa [#allocation7 + $0x1], 0 }
   0xa   :  { %17 = vsyncpa [#allocation5], 0 }
   0xb   :  { %19 = vsyncpa [#allocation5 + $0x1], 0  ;;  %s1877_s21 = smov 0   ;;  %s1879_s22 = smov 0  }
   0xc   :  { %s1881_s23 = smov 0   ;;  %s1883_s24 = smov 0  }
   0xd   :  { %s1885_s25 = smov 0   ;;  %s1887_s26 = smov 0  }
   0xe   :  { %s1889_s27 = smov 0   ;;  %s1891_s28 = smov 0  }
   0xf   :  { %s1893_s29 = smov 0   ;;  %s1895_s30 = smov 0  }
  0x10   :  { %s1897_s7 = smov 0   ;;  %s1899_s8 = smov 0  }
  0x11   :  { %s1901_s9 = smov 0   ;;  %s1903_s10 = smov 0  }
  0x12 LB: > { %2387 = sst [smem:[#allocation14_spill]] %s1778_s21  ;;  %s1944_s11 = sadd.s32 4294967295, %s1830_s10   ;;  %s1830_s10 = sphi %s1903_s10, %s25_s10   ;;  %s1826_s9 = sphi %s1901_s9, %s2449_s9   ;;  %s1822_s8 = sphi %s1899_s8, %s2448_s8   ;;  %s1818_s7 = sphi %s1897_s7, %s2447_s7   ;;  %s1814_s30 = sphi %s1895_s30, %s2446_s30   ;;  %s1810_s29 = sphi %s1893_s29, %s2445_s29   ;;  %s1806_s28 = sphi %s1891_s28, %s2444_s28   ;;  %s1802_s27 = sphi %s1889_s27, %s2443_s27   ;;  %s1798_s26 = sphi %s1887_s26, %s2442_s26   ;;  %s1794_s25 = sphi %s1885_s25, %s2441_s25   ;;  %s1790_s24 = sphi %s1883_s24, %s2440_s24   ;;  %s1786_s23 = sphi %s1881_s23, %s2439_s23   ;;  %s1782_s22 = sphi %s1879_s22, %s2438_s22   ;;  %s1778_s21 = sphi %s1877_s21, %s2434_s21  }
  0x13   : > { %2388 = sst [smem:[#allocation15_spill]] %s1782_s22  ;;  %s1156_s12 = sadd.s32 4294967294, %s1830_s10  }
  0x14   : > { %2389 = sst [smem:[#allocation16_spill]] %s1814_s30  ;;  %p59_p0 = scmp.ne.s32.totalorder %s1806_s28, %s1802_s27 }
  0x15   : > { %2390 = sst [smem:[#allocation17_spill]] %s1818_s7  ;;  %p2364_p1 = scmp.eq.s32.totalorder %s1944_s11, 0 }
  0x16   : > { %2391 = sst [smem:[#allocation18_spill]] %s1944_s11  ;;  %p85_p2 = scmp.ne.s32.totalorder %s1794_s25, %s1790_s24 }
  0x17   : > { %p1953_p3 = por %p2364_p1, %p59_p0  ;;  %p192_p4 = scmp.ne.s32.totalorder %s1786_s23, %s1782_s22 }
  0x18   : > { %p1961_p5 = por %p85_p2, %p2364_p1  ;;  %p193_p6 = scmp.eq.s32.totalorder %s1944_s11, 3 }
  0x19   : > { %s2392_s14 = scalar_select %p1953_p3, 1, 0 }
  0x1a   : > { %s2393_s15 = scalar_select %p1961_p5, 1, 0 }
  0x1b   : > { %p198_p7 = scmp.ne.s32.totalorder %s1782_s22, %s1778_s21  ;;  %p199_p8 = scmp.eq.s32.totalorder %s1156_s12, 3 }
  0x1c   : > { %2394 = sst [smem:[#allocation19_spill]] %s2393_s15  ;;  %p1968_p9 = por %p193_p6, %p192_p4 }
  0x1d   : > { %p1157_p10 = scmp.ge.s32.totalorder %s1830_s10, 1  ;;  %p1973_p11 = por %p199_p8, %p198_p7 }
  0x1e   : > { %s2395_s16 = scalar_select %p1968_p9, 1, 0 }
  0x1f   : > { %s2397_s17 = scalar_select %p1973_p11, 1, 0 }
  0x20   : > { %2396 = sst [smem:[#allocation20_spill]] %s2395_s16  ;;  %p206_p12 = scmp.lt.s32.totalorder %s1830_s10, 5 }
  0x21   : > { %2398 = sst [smem:[#allocation21_spill]] %s2397_s17  ;;  %s1832_s19 = smov [#allocation8]  }
  0x22   : > { %p1978_p13 = pnand %p1157_p10, %p206_p12  ;;  %s218_s20 = sshll.u32 %s1832_s19, 4  ;;  %s219_s20 = int_to_ptr.vmem [resolvable:$true] %s218_s20 }
  0x23   : > { %s2401_s2 = sld [smem:[#allocation23_spill]] }
  0x24   : > { %s2399_s18 = scalar_select %p1978_p13, 1, 0 }
  0x25   : > { %p1426_p0 = pneg %p1978_p13 }
  0x27   : > { %p1986_p2 = pnand %p1426_p0, %p2364_p1 }
  0x29   : > { %s1588_s13 = scalar_lea.hbm %s2401_s2, 1024  ;;  %p1590_p6 = pneg %p1986_p2 }
  0x2a   : > { %p1589_p4 = scmp.ne.s32.totalorder %s2401_s2, %s1588_s13  ;;  %p1595_p10 = scmp.lt.u32.totalorder %s1588_s13, %s2401_s2 }
  0x2c   : > { %p1591_p7 = pnand %p1590_p6, %p1589_p4 }
  0x2e   : > { %p1592_p8 = pneg %p1591_p7 }
  0x30   : > { %p1597_p12 = pnand %p1595_p10, %p1592_p8 }
  0x32   : > { %1600 = shalt.err (!%p1597_p12)
}
  0x33   : > { %s1601_s16 = scalar_lea.vmem %s219_s20, 1024  ;;  %p1609_p9 = scmp.lt.s32.totalorder %s219_s20, %s219_s20 }
  0x34   : > { %p1602_p0 = scmp.ne.s32.totalorder %s219_s20, %s1601_s16  ;;  %p1610_p5 = scmp.lt.s32.totalorder %s1601_s16, %s1601_s16 }
  0x36   : > { %p1604_p1 = pnand %p1602_p0, %p1590_p6  ;;  %p1611_p3 = por %p1610_p5, %p1609_p9 }
  0x38   : > { %p1605_p11 = pneg %p1604_p1 }
  0x3a   : > { %p1612_p13 = pnand %p1611_p3, %p1605_p11 }
  0x3c   : > { %1615 = shalt.err (!%p1612_p13)
}
  0x3d   : > { %s2369_s21 = smov 64   ;;  %s2371_s6 = smov 4  }
  0x3e   : > { %1429 = dma.hbm_to_vmem [thread:$0]  (!%p1986_p2), %s2401_s2, 1024, %s219_s20, [#allocation7], %s2369_s21, %s2369_s21, %s2371_s6  }
  0x3f   : > { %s34_s17 = sadd.s32 1, %s1822_s8  ;;  %s37_s27 = sadd.s32 1, %s1826_s9 }
  0x40   : > { %p35_p1 = scmp.ge.s32.totalorder %s34_s17, 2  ;;  %s46_s12 = sadd.s32 1, %s1810_s29 }
  0x41   : > { %p53_p3 = scmp.ne.s32.totalorder %s1810_s29, %s1806_s28  ;;  %p2381_p5 = scmp.eq.s32.totalorder %s1830_s10, 0 }
  0x42   : > { %s2451_s17 = smov (%p35_p1, %s34_s17), 0  ;;  %s2453_s27 = smov (!%p35_p1, %s37_s27), %s1826_s9 }
  0x43   : > { %2402 = sst [smem:[#allocation22_spill]] %s2451_s17  ;;  %s2019_s24 = ssub.s32 %s1822_s8, %s2451_s17 }
  0x44   : > { %p39_p9 = scmp.ge.s32.totalorder %s2453_s27, 2  ;;  %p70_p11 = scmp.eq.s32.totalorder %s2019_s24, 0 }
  0x45   : > { %p2025_p13 = por %p2381_p5, %p53_p3  ;;  %p2380_p2 = scmp.lt.s32.totalorder %s1830_s10, 4 }
  0x46   : > { %s2455_s27 = smov (%p39_p9, %s2453_s27), 0  ;;  %s241_s19 = sand.u32 1, %s1810_s29  }
  0x47   : > { %s1222_s13 = sshll.u32 %s1826_s9, 5  ;;  %s41_s16 = ssub.s32 %s1826_s9, %s2455_s27 }
  0x48   : > { %s43_s21 = sor.u32 %s2019_s24, %s41_s16  ;;  %p180_p4 = scmp.eq.s32.totalorder %s41_s16, 0 }
  0x49   : > { %p44_p6 = scmp.eq.s32.totalorder %s43_s21, 0  ;;  %s1160_s6 = sshll.u32 %s241_s19, 6 }
  0x4a   : > { %s2404_s2 = sadd.s32 1, %s1786_s23  ;;  %s251_s5 = sadd.s32 %s1822_s8, %s1222_s13 }
  0x4b   : > { %s2040_s17 = scalar_select %p180_p4, %s1786_s23, %s2404_s2  }
  0x4c   : > { %s2043_s7 = scalar_select %p44_p6, %s1810_s29, %s46_s12  }
  0x4d   : > { %s1163_s4 = sshll.u32 %s251_s5, 6  ;;  %s245_s3 = scalar_lea.vmem [#allocation3], %s1160_s6 }
  0x4e   : > { %s254_s30 = sshll.u32 %s245_s3, 4  ;;  %s2049_s11 = scalar_lea.hbm %s2352_s0, %s1163_s4  ;;  %s2051_s30 = int_to_ptr.vmem [resolvable:$true] %s254_s30 }
  0x4f   : > { %p2057_p7 = pnand %p2380_p2, %p2025_p13  ;;  %s264_s3 = sand.u32 1, %s1830_s10  }
  0x50   : > { %s2062_s5 = scalar_lea.sflag [#allocation4], %s241_s19  ;;  %s1616_s22 = scalar_lea.hbm %s2049_s11, 1024 }
  0x51   : > { %p1617_p8 = scmp.ne.s32.totalorder %s2049_s11, %s1616_s22  ;;  %p1618_p10 = pneg %p2057_p7 }
  0x52   : > { %s1621_s21 = scalar_lea.hbm %s2352_s0, 4096  ;;  %p1622_p1 = scmp.lt.u32.totalorder %s2049_s11, %s2352_s0 }
  0x53   : > { %p1619_p12 = pnand %p1618_p10, %p1617_p8  ;;  %p1623_p3 = scmp.lt.u32.totalorder %s1621_s21, %s1616_s22 }
  0x54   : > { %p1625_p13 = scmp.lt.u32.totalorder %s1616_s22, %s2049_s11 }
  0x55   : > { %p1620_p0 = pneg %p1619_p12  ;;  %p1624_p9 = por %p1623_p3, %p1622_p1 }
  0x57   : > { %p1626_p4 = por %p1625_p13, %p1624_p9 }
  0x59   : > { %p1627_p6 = pnand %p1626_p4, %p1620_p0 }
  0x5b   : > { %1630 = shalt.err (!%p1627_p6)
}
  0x5c   : > { %s1631_s20 = scalar_lea.vmem %s2051_s30, 1024  ;;  %s1835_s19 = smov [#allocation3]  }
  0x5d   : > { %p1632_p8 = scmp.ne.s32.totalorder %s2051_s30, %s1631_s20  ;;  %s1636_s13 = sshll.u32 %s1835_s19, 4  ;;  %s1637_s13 = int_to_ptr.vmem [resolvable:$false] %s1636_s13 }
  0x5e   : > { %s1638_s16 = scalar_lea.vmem %s1637_s13, 2048  ;;  %p1639_p5 = scmp.lt.s32.totalorder %s2051_s30, %s1637_s13 }
  0x5f   : > { %p1634_p12 = pnand %p1632_p8, %p1618_p10  ;;  %p1640_p1 = scmp.lt.s32.totalorder %s1638_s16, %s1631_s20 }
  0x61   : > { %p1635_p2 = pneg %p1634_p12  ;;  %p1641_p3 = por %p1640_p1, %p1639_p5 }
  0x63   : > { %p1642_p9 = pnand %p1641_p3, %p1635_p2 }
  0x65   : > { %1645 = shalt.err (!%p1642_p9)
}
  0x66   : > { %s1836_s22 = smov 128   ;;  %s2406_s4 = smov 4  }
  0x67   : > { %s2407_s15 = smov 64   ;;  %s72_s21 = sadd.s32 1, %s1798_s26 }
  0x68   : > { %1433 = dma.hbm_to_vmem [thread:$0]  (!%p2057_p7), %s2049_s11, 1024, %s2051_s30, %s2062_s5, %s1836_s22, %s2407_s15, %s2406_s4  }
  0x69   : > { %p79_p5 = scmp.ne.s32.totalorder %s1798_s26, %s1794_s25  ;;  %p2408_p2 = scmp.eq.s32.totalorder %s1830_s10, 0 }
  0x6a   : > { %s2098_s2 = scalar_select %p70_p11, %s1798_s26, %s72_s21  }
  0x6b   : > { %p81_p10 = por %p79_p5, %p2408_p2  ;;  %s266_s6 = sand.u32 1, %s1798_s26  }
  0x6c   : > { %s1223_s12 = sshll.u32 %s1822_s8, 10  ;;  %s1164_s20 = sshll.u32 %s266_s6, 6 }
  0x6d   : > { %s2107_s16 = scalar_lea.hbm %s2353_s1, %s1223_s12  ;;  %p2409_p0 = scmp.lt.s32.totalorder %s1830_s10, 4 }
  0x6e   : > { %s268_s11 = scalar_lea.vmem [#allocation6], %s1164_s20  ;;  %s2119_s5 = scalar_lea.sflag [#allocation7], %s264_s3 }
  0x6f   : > { %p2111_p7 = pnand %p2409_p0, %p81_p10  ;;  %s275_s24 = sshll.u32 %s268_s11, 4  ;;  %s2115_s24 = int_to_ptr.vmem [resolvable:$true] %s275_s24 }
  0x70   : > { %s1646_s22 = scalar_lea.hbm %s2107_s16, 1024  ;;  %s1651_s12 = scalar_lea.hbm %s2353_s1, 2048 }
  0x71   : > { %p1647_p11 = scmp.ne.s32.totalorder %s2107_s16, %s1646_s22  ;;  %p1648_p13 = pneg %p2111_p7 }
  0x72   : > { %p1652_p8 = scmp.lt.u32.totalorder %s2107_s16, %s2353_s1  ;;  %p1653_p12 = scmp.lt.u32.totalorder %s1651_s12, %s1646_s22 }
  0x73   : > { %p1649_p4 = pnand %p1648_p13, %p1647_p11  ;;  %p1655_p3 = scmp.lt.u32.totalorder %s1646_s22, %s2107_s16 }
  0x74   : > { %p1654_p1 = por %p1653_p12, %p1652_p8 }
  0x75   : > { %p1650_p6 = pneg %p1649_p4 }
  0x76   : > { %p1656_p9 = por %p1655_p3, %p1654_p1 }
  0x78   : > { %p1657_p5 = pnand %p1656_p9, %p1650_p6 }
  0x7a   : > { %1660 = shalt.err (!%p1657_p5)
}
  0x7b   : > { %s1661_s3 = scalar_lea.vmem %s2115_s24, 1024  ;;  %s1837_s13 = smov [#allocation6]  }
  0x7c   : > { %p1662_p2 = scmp.ne.s32.totalorder %s2115_s24, %s1661_s3  ;;  %s1666_s11 = sshll.u32 %s1837_s13, 4  ;;  %s1667_s11 = int_to_ptr.vmem [resolvable:$false] %s1666_s11 }
  0x7d   : > { %s1668_s21 = scalar_lea.vmem %s1667_s11, 2048  ;;  %p1669_p11 = scmp.lt.s32.totalorder %s2115_s24, %s1667_s11 }
  0x7e   : > { %p1664_p10 = pnand %p1662_p2, %p1648_p13  ;;  %p1670_p4 = scmp.lt.s32.totalorder %s1668_s21, %s1661_s3 }
  0x80   : > { %p1665_p0 = pneg %p1664_p10  ;;  %p1671_p8 = por %p1670_p4, %p1669_p11 }
  0x82   : > { %p1672_p12 = pnand %p1671_p8, %p1665_p0 }
  0x84   : > { %1675 = shalt.err (!%p1672_p12)
}
  0x85   : > { %1436 = dma.hbm_to_vmem [thread:$0]  (!%p2111_p7), %s2107_s16, 1024, %s2115_s24, %s2119_s5, %s2407_s15, %s2407_s15, %s2406_s4  }
  0x86   : > { %p2411_p13 = scmp.ne.s32.totalorder %s2399_s18, 0 }
  0x87   : > { %s289_s22 = sand.u32 (!%p2411_p13), 1, %s1806_s28   ;;  %p2412_p6 = scmp.ne.s32.totalorder (!%p2411_p13), %s2392_s14, 0 }
  0x88   : > { %287 = sbr.rel (%p2411_p13) target bundleno = 709 (0x2c5), region = 44  ;;  %s1168_s6 = sshll.u32 (!%p2411_p13), %s289_s22, 6 }
  0x89   : > { %s290_s12 = scalar_lea.sflag (!%p2411_p13), [#allocation4], %s289_s22  ;;  %s2153_s19 = scalar_lea.vmem (!%p2411_p13), [#allocation3], %s1168_s6 }
  0x8f   : > { %1761 = dma.done.wait (%p2412_p6), %s290_s12, 1024  }
  0x90   : > { %1763 = vsyncadd (%p2412_p6), %s290_s12, 4294966272  ;;  %s2413_s30 = sld [smem:[#allocation18_spill]]  ;;  %s2414_s20 = sld [smem:[#allocation19_spill]] }
  0x91   : > { %s300_s4 = sand.u32 1, %s1794_s25  }
  0x92   : > { %s1169_s15 = sshll.u32 %s300_s4, 6 }
  0x93   : > { %s2161_s16 = scalar_lea.vmem [#allocation6], %s1169_s15 }
  0x96   : > { %s298_s3 = sand.u32 1, %s2413_s30   ;;  %p2415_p7 = scmp.ne.s32.totalorder %s2414_s20, 0 }
  0x97   : > { %s299_s18 = scalar_lea.sflag [#allocation7], %s298_s3 }
  0x98   : > { %1765 = dma.done.wait (%p2415_p7), %s299_s18, 1024  }
  0x99   : > { %1767 = vsyncadd (%p2415_p7), %s299_s18, 4294966272  ;;  %p2416_p1 = scmp.eq.s32.totalorder %s2413_s30, 0 }
  0x9b   : > { %1769 = dma.done.wait (%p2416_p1), [#allocation7], 1024   ;;  %p2417_p3 = pmov %p2416_p1 }
  0x9c   : > { %s2418_s14 = sld [smem:[#allocation15_spill]]  ;;  %s2419_s11 = sld [smem:[#allocation16_spill]] }
  0x9d   : > { %1771 = vsyncadd (%p2417_p3), [#allocation7], 4294966272 }
  0xa2   : > { %s337_s24 = sand.u32 1, %s2418_s14   ;;  %p1172_p9 = scmp.ne.s32.totalorder %s2419_s11, 0 }
  0xa3   : > { %s1171_s5 = sshll.u32 %s337_s24, 6  ;;  %v1838_v0 = vmov (!%p1172_p9), 0.0  }
  0xa4   : > { %s2174_s13 = scalar_lea.vmem [#allocation9], %s1171_s5  ;;  %347 = sbr.rel (%p1172_p9) target bundleno = 172 (0xac), region = 60  ;;  %348 = vst [vmem:[#allocation2] sm:$0xff] (!%p1172_p9), %v1838_v0  ;;  %349 = vst [vmem:[#allocation2 + $0x8] sm:$0xff] (!%p1172_p9), %v1838_v0 }
  0xa5   : > { %350 = vst [vmem:[#allocation2 + $0x10] sm:$0xff] (!%p1172_p9), %v1838_v0  ;;  %351 = vst [vmem:[#allocation2 + $0x18] sm:$0xff] (!%p1172_p9), %v1838_v0 }
  0xa6   : > { %352 = vst [vmem:[#allocation2 + $0x20] sm:$0xff] (!%p1172_p9), %v1838_v0  ;;  %353 = vst [vmem:[#allocation2 + $0x28] sm:$0xff] (!%p1172_p9), %v1838_v0 }
  0xa7   : > { %354 = vst [vmem:[#allocation2 + $0x30] sm:$0xff] (!%p1172_p9), %v1838_v0  ;;  %355 = vst [vmem:[#allocation2 + $0x38] sm:$0xff] (!%p1172_p9), %v1838_v0 }
  0xa8   : > { %356 = vst [vmem:[#allocation2 + $0x40] sm:$0xff] (!%p1172_p9), %v1838_v0  ;;  %357 = vst [vmem:[#allocation2 + $0x48] sm:$0xff] (!%p1172_p9), %v1838_v0 }
  0xa9   : > { %358 = vst [vmem:[#allocation2 + $0x50] sm:$0xff] (!%p1172_p9), %v1838_v0  ;;  %359 = vst [vmem:[#allocation2 + $0x58] sm:$0xff] (!%p1172_p9), %v1838_v0 }
  0xaa   : > { %360 = vst [vmem:[#allocation2 + $0x60] sm:$0xff] (!%p1172_p9), %v1838_v0  ;;  %361 = vst [vmem:[#allocation2 + $0x68] sm:$0xff] (!%p1172_p9), %v1838_v0 }
  0xab   : > { %362 = vst [vmem:[#allocation2 + $0x70] sm:$0xff] %v1838_v0  ;;  %363 = vst [vmem:[#allocation2 + $0x78] sm:$0xff] %v1838_v0 }
  0xac PF: > { %v1564_v1 = vld [vmem:[%s2161_s16] sm:$0xff]   ;;  %v1565_v2 = vld [vmem:[%s2161_s16 + $0x8] sm:$0xff]   ;;  %v1566_v3 = vld [vmem:[%s2161_s16 + $0x10] sm:$0xff]   ;;  %s2420_s21 = sld [smem:[#allocation16_spill]] }
  0xad   : > { %1320 = vmatprep.subr.bf16.mxu0 %v1564_v1  ;;  %1384 = vmatprep.subr.bf16.mxu1 %v1564_v1  ;;  %v1567_v4 = vld [vmem:[%s2161_s16 + $0x18] sm:$0xff]   ;;  %v1572_v5 = vld [vmem:[%s2153_s19] sm:$0xff]   ;;  %v1569_v8 = vld [vmem:[%s2161_s16 + $0x28] sm:$0xff]  }
  0xae   : > { %1321 = vmatpush3.bf16.msra.mxu0 %v1564_v1  ;;  %1392 = vmatpush3.bf16.msra.mxu1 %v1564_v1  ;;  %v1573_v6 = vld [vmem:[%s2153_s19 + $0x20] sm:$0xff]   ;;  %v1570_v9 = vld [vmem:[%s2161_s16 + $0x30] sm:$0xff]   ;;  %v1571_v10 = vld [vmem:[%s2161_s16 + $0x38] sm:$0xff]  }
  0xaf   : > { %1322 = vmatprep.subr.bf16.mxu0 %v1565_v2  ;;  %1385 = vmatprep.subr.bf16.mxu1 %v1565_v2  ;;  %v1568_v7 = vld [vmem:[%s2161_s16 + $0x20] sm:$0xff]   ;;  %v1574_v11 = vld [vmem:[%s2153_s19 + $0x8] sm:$0xff]   ;;  %v1576_v13 = vld [vmem:[%s2153_s19 + $0x10] sm:$0xff]  }
  0xb0   : > { %1336 = vmatprep.mubr.bf16.mxu0 %v1572_v5  ;;  %1344 = vmatprep.mubr.bf16.mxu1 %v1573_v6  ;;  %v1575_v12 = vld [vmem:[%s2153_s19 + $0x28] sm:$0xff]   ;;  %v1577_v14 = vld [vmem:[%s2153_s19 + $0x30] sm:$0xff]   ;;  %v1578_v15 = vld [vmem:[%s2153_s19 + $0x18] sm:$0xff]  }
  0xb1   : > { %v1579_v16 = vld [vmem:[%s2153_s19 + $0x38] sm:$0xff]   ;;  %v366_v17 = vld [vmem:[#allocation2 + $0x10] sm:$0xff]  ;;  %v364_v19 = vld [vmem:[#allocation2] sm:$0xff] }
  0xb2   : > { %1323 = vmatpush3.bf16.msra.mxu0 %v1565_v2  ;;  %1393 = vmatpush3.bf16.msra.mxu1 %v1565_v2  ;;  %v374_v18 = vld [vmem:[#allocation2 + $0x50] sm:$0xff]  ;;  %v372_v20 = vld [vmem:[#allocation2 + $0x40] sm:$0xff]  ;;  %v367_v23 = vld [vmem:[#allocation2 + $0x18] sm:$0xff]  ;;  %p1189_p5 = scmp.ne.s32.totalorder %s2420_s21, 1 }
  0xb3   : > { %1324 = vmatprep.subr.bf16.mxu0 %v1566_v3  ;;  %1386 = vmatprep.subr.bf16.mxu1 %v1566_v3  ;;  %v375_v24 = vld [vmem:[#allocation2 + $0x58] sm:$0xff]  ;;  %v365_v29 = vld [vmem:[#allocation2 + $0x8] sm:$0xff]  ;;  %v370_v41 = vld [vmem:[#allocation2 + $0x30] sm:$0xff]  ;;  %s2421_s12 = sld [smem:[#allocation24_spill]] (!%p1189_p5)  ;;  %s2422_s20 = sld [smem:[#allocation25_spill]] (!%p1189_p5) }
  0xb4   : > { %v373_v30 = vld [vmem:[#allocation2 + $0x48] sm:$0xff]  ;;  %v378_v42 = vld [vmem:[#allocation2 + $0x70] sm:$0xff]  ;;  %v368_v43 = vld [vmem:[#allocation2 + $0x20] sm:$0xff]  ;;  %s2423_s15 = sld [smem:[#allocation26_spill]] (!%p1189_p5) }
  0xb5   : > { %v376_v44 = vld [vmem:[#allocation2 + $0x60] sm:$0xff]  ;;  %v371_v47 = vld [vmem:[#allocation2 + $0x38] sm:$0xff]  ;;  %v369_v53 = vld [vmem:[#allocation2 + $0x28] sm:$0xff] }
  0xb6   : > { %1325 = vmatpush3.bf16.msra.mxu0 %v1566_v3  ;;  %1394 = vmatpush3.bf16.msra.mxu1 %v1566_v3  ;;  %v379_v48 = vld [vmem:[#allocation2 + $0x78] sm:$0xff]  ;;  %v377_v54 = vld [vmem:[#allocation2 + $0x68] sm:$0xff]  ;;  %v1580_v1 = vld [vmem:[#allocation8] sm:$0xff] (!%p1189_p5)  }
  0xb7   : > { %1326 = vmatprep.subr.bf16.mxu0 %v1567_v4  ;;  %1387 = vmatprep.subr.bf16.mxu1 %v1567_v4  ;;  %v1581_v2 = vld [vmem:[#allocation8 + $0x8] sm:$0xff] (!%p1189_p5)   ;;  %v1582_v3 = vld [vmem:[#allocation8 + $0x10] sm:$0xff] (!%p1189_p5)  }
  0xba   : > { %1327 = vmatpush3.bf16.msra.mxu0 %v1567_v4  ;;  %1395 = vmatpush3.bf16.msra.mxu1 %v1567_v4  ;;  %v1583_v4 = vld [vmem:[#allocation8 + $0x18] sm:$0xff] (!%p1189_p5)  }
  0xbb   : > { %1328 = vmatprep.subr.bf16.mxu0 %v1568_v7  ;;  %1388 = vmatprep.subr.bf16.mxu1 %v1568_v7 }
  0xbe   : > { %1329 = vmatpush3.bf16.msra.mxu0 %v1568_v7  ;;  %1396 = vmatpush3.bf16.msra.mxu1 %v1568_v7 }
  0xbf   : > { %1330 = vmatprep.subr.bf16.mxu0 %v1569_v8  ;;  %1389 = vmatprep.subr.bf16.mxu1 %v1569_v8 }
  0xc2   : > { %1331 = vmatpush3.bf16.msra.mxu0 %v1569_v8  ;;  %1397 = vmatpush3.bf16.msra.mxu1 %v1569_v8 }
  0xc3   : > { %1332 = vmatprep.subr.bf16.mxu0 %v1570_v9  ;;  %1390 = vmatprep.subr.bf16.mxu1 %v1570_v9 }
  0xc6   : > { %1333 = vmatpush3.bf16.msra.mxu0 %v1570_v9  ;;  %1398 = vmatpush3.bf16.msra.mxu1 %v1570_v9 }
  0xc7   : > { %1334 = vmatprep.subr.bf16.mxu0 %v1571_v10  ;;  %1391 = vmatprep.subr.bf16.mxu1 %v1571_v10 }
  0xca   : > { %1335 = vmatpush3.bf16.msra.mxu0 %v1571_v10  ;;  %1399 = vmatpush3.bf16.msra.mxu1 %v1571_v10 }
  0xcb   : > { %1352 = vmatprep.subr.bf16.mxu0 (!%p1189_p5), %v1580_v1  ;;  %1400 = vmatprep.subr.bf16.mxu1 (!%p1189_p5), %v1580_v1 }
  0xcd   : > { %1337 = vmatmul.mubr.bf16.vlgmr.msra.gmra.mrb[0].mxu0 %v1574_v11  ;;  %1345 = vmatmul.mubr.bf16.vlgmr.msra.gmra.mrb[0].mxu1 %v1575_v12  ;;  %v1584_v11 = vld [vmem:[#allocation8 + $0x20] sm:$0xff] (!%p1189_p5)   ;;  %v1585_v12 = vld [vmem:[#allocation8 + $0x28] sm:$0xff] (!%p1189_p5)  }
  0xce   : > { %1340 = vmatprep.mubr.bf16.mxu0 %v1576_v13  ;;  %1348 = vmatprep.mubr.bf16.mxu1 %v1577_v14  ;;  %v1586_v13 = vld [vmem:[#allocation8 + $0x30] sm:$0xff] (!%p1189_p5)   ;;  %v1587_v14 = vld [vmem:[#allocation8 + $0x38] sm:$0xff] (!%p1189_p5)  }
  0xcf   : > { %1353 = vmatpush3.bf16.msra.mxu0 (!%p1189_p5), %v1580_v1  ;;  %1408 = vmatpush3.bf16.msra.mxu1 (!%p1189_p5), %v1580_v1 }
  0xd0   : > { %1354 = vmatprep.subr.bf16.mxu0 (!%p1189_p5), %v1581_v2  ;;  %1401 = vmatprep.subr.bf16.mxu1 (!%p1189_p5), %v1581_v2 }
  0xd3   : > { %1355 = vmatpush3.bf16.msra.mxu0 (!%p1189_p5), %v1581_v2  ;;  %1409 = vmatpush3.bf16.msra.mxu1 (!%p1189_p5), %v1581_v2 }
  0xd4   : > { %1356 = vmatprep.subr.bf16.mxu0 (!%p1189_p5), %v1582_v3  ;;  %1402 = vmatprep.subr.bf16.mxu1 (!%p1189_p5), %v1582_v3 }
  0xd5   : > { %1341 = vmatmul.mubr.bf16.gmra.mrb[4].mxu0 %v1578_v15  ;;  %1349 = vmatmul.mubr.bf16.gmra.mrb[4].mxu1 %v1579_v16 }
  0xd7   : > { %1357 = vmatpush3.bf16.msra.mxu0 (!%p1189_p5), %v1582_v3  ;;  %1410 = vmatpush3.bf16.msra.mxu1 (!%p1189_p5), %v1582_v3 }
  0xd8   : > { %1358 = vmatprep.subr.bf16.mxu0 (!%p1189_p5), %v1583_v4  ;;  %1403 = vmatprep.subr.bf16.mxu1 (!%p1189_p5), %v1583_v4 }
  0xdb   : > { %1359 = vmatpush3.bf16.msra.mxu0 (!%p1189_p5), %v1583_v4  ;;  %1411 = vmatpush3.bf16.msra.mxu1 (!%p1189_p5), %v1583_v4 }
  0xdc   : > { %1360 = vmatprep.subr.bf16.mxu0 (!%p1189_p5), %v1584_v11  ;;  %1404 = vmatprep.subr.bf16.mxu1 (!%p1189_p5), %v1584_v11 }
  0xdf   : > { %1361 = vmatpush3.bf16.msra.mxu0 (!%p1189_p5), %v1584_v11  ;;  %1412 = vmatpush3.bf16.msra.mxu1 (!%p1189_p5), %v1584_v11 }
  0xe0   : > { %1362 = vmatprep.subr.bf16.mxu0 (!%p1189_p5), %v1585_v12  ;;  %1405 = vmatprep.subr.bf16.mxu1 (!%p1189_p5), %v1585_v12 }
  0xe3   : > { %1363 = vmatpush3.bf16.msra.mxu0 (!%p1189_p5), %v1585_v12  ;;  %1413 = vmatpush3.bf16.msra.mxu1 (!%p1189_p5), %v1585_v12 }
  0xe4   : > { %1364 = vmatprep.subr.bf16.mxu0 (!%p1189_p5), %v1586_v13  ;;  %1406 = vmatprep.subr.bf16.mxu1 (!%p1189_p5), %v1586_v13 }
  0xe7   : > { %1365 = vmatpush3.bf16.msra.mxu0 (!%p1189_p5), %v1586_v13  ;;  %1414 = vmatpush3.bf16.msra.mxu1 (!%p1189_p5), %v1586_v13 }
  0xe8   : > { %1366 = vmatprep.subr.bf16.mxu0 (!%p1189_p5), %v1587_v14  ;;  %1407 = vmatprep.subr.bf16.mxu1 (!%p1189_p5), %v1587_v14 }
  0xeb   : > { %1367 = vmatpush3.bf16.msra.mxu0 (!%p1189_p5), %v1587_v14  ;;  %1415 = vmatpush3.bf16.msra.mxu1 (!%p1189_p5), %v1587_v14 }
 0x1a0   : > { %v1338_v21 = vpop.f32.mrb[0].mxu0  ;;  %v1346_v22 = vpop.f32.mrb[0].mxu1 }
 0x1a1   : > { %v607_v25 = vadd.f32 %v1338_v21, %v366_v17  ;;  %v615_v26 = vadd.f32 %v1346_v22, %v374_v18  ;;  %v542_v27 = vpop.f32.mrb[1].mxu0  ;;  %v574_v28 = vpop.f32.mrb[1].mxu1 }
 0x1a2   : > { %v605_v31 = vadd.f32 %v542_v27, %v364_v19  ;;  %v613_v32 = vadd.f32 %v574_v28, %v372_v20  ;;  %v1339_v33 = vpop.f32.mrb[2].mxu0  ;;  %v1347_v34 = vpop.f32.mrb[2].mxu1 }
 0x1a3   : > { %623 = vst [vmem:[#allocation2 + $0x10] sm:$0xff] %v607_v25  ;;  %631 = vst [vmem:[#allocation2 + $0x50] sm:$0xff] %v615_v26  ;;  %v608_v35 = vadd.f32 %v1339_v33, %v367_v23  ;;  %v616_v36 = vadd.f32 %v1347_v34, %v375_v24  ;;  %v545_v37 = vpop.f32.mrb[3].mxu0  ;;  %v577_v38 = vpop.f32.mrb[3].mxu1  ;;  %v2197_v33 = vld [vmem:[%s2421_s12] ss:$0 sm:$0xff] (!%p1189_p5) }
 0x1a4   : > { %621 = vst [vmem:[#allocation2] sm:$0xff] %v605_v31  ;;  %629 = vst [vmem:[#allocation2 + $0x40] sm:$0xff] %v613_v32  ;;  %v606_v39 = vadd.f32 %v545_v37, %v365_v29  ;;  %v614_v40 = vadd.f32 %v577_v38, %v373_v30 }
 0x1a5   : > { %624 = vst [vmem:[#allocation2 + $0x18] sm:$0xff] %v608_v35  ;;  %632 = vst [vmem:[#allocation2 + $0x58] sm:$0xff] %v616_v36 }
 0x1a6   : > { %622 = vst [vmem:[#allocation2 + $0x8] sm:$0xff] %v606_v39  ;;  %630 = vst [vmem:[#allocation2 + $0x48] sm:$0xff] %v614_v40  ;;  %v2204_v40 = vld [vmem:[%s2422_s20] ss:$0 sm:$0xff] (!%p1189_p5) }
 0x1a8   : > { %v1342_v45 = vpop.f32.mrb[4].mxu0  ;;  %v1350_v46 = vpop.f32.mrb[4].mxu1  ;;  %640 = sbr.rel (%p1189_p5) target bundleno = 681 (0x2a9), region = 64 }
 0x1a9   : > { %v611_v49 = vadd.f32 %v1342_v45, %v370_v41  ;;  %v619_v50 = vadd.f32 %v1350_v46, %v378_v42  ;;  %v558_v51 = vpop.f32.mrb[5].mxu0  ;;  %v590_v52 = vpop.f32.mrb[5].mxu1 }
 0x1aa   : > { %v609_v55 = vadd.f32 %v558_v51, %v368_v43  ;;  %v617_v56 = vadd.f32 %v590_v52, %v376_v44  ;;  %v1343_v57 = vpop.f32.mrb[6].mxu0  ;;  %v1351_v58 = vpop.f32.mrb[6].mxu1  ;;  %v643_v15 = vld [vmem:[#allocation2 + $0x10] sm:$0xff] (!%p1189_p5)  ;;  %v2213_v51 = vld [vmem:[%s2423_s15] ss:$0 sm:$0xff] (!%p1189_p5) }
 0x1ab   : > { %627 = vst [vmem:[#allocation2 + $0x30] sm:$0xff] %v611_v49  ;;  %635 = vst [vmem:[#allocation2 + $0x70] sm:$0xff] %v619_v50  ;;  %v612_v59 = vadd.f32 %v1343_v57, %v371_v47  ;;  %v620_v60 = vadd.f32 %v1351_v58, %v379_v48  ;;  %v561_v61 = vpop.f32.mrb[7].mxu0  ;;  %v593_v62 = vpop.f32.mrb[7].mxu1  ;;  %v641_v5 = vld [vmem:[#allocation2] sm:$0xff] (!%p1189_p5)  ;;  %v651_v17 = vld [vmem:[#allocation2 + $0x50] sm:$0xff] (!%p1189_p5) }
 0x1ac   : > { %625 = vst [vmem:[#allocation2 + $0x20] sm:$0xff] %v609_v55  ;;  %633 = vst [vmem:[#allocation2 + $0x60] sm:$0xff] %v617_v56  ;;  %v610_v63 = vadd.f32 %v561_v61, %v369_v53  ;;  %v618_v0 = vadd.f32 %v593_v62, %v377_v54  ;;  %v649_v7 = vld [vmem:[#allocation2 + $0x40] sm:$0xff] (!%p1189_p5)  ;;  %v644_v16 = vld [vmem:[#allocation2 + $0x18] sm:$0xff] (!%p1189_p5) }
 0x1ad   : > { %628 = vst [vmem:[#allocation2 + $0x38] sm:$0xff] %v612_v59  ;;  %636 = vst [vmem:[#allocation2 + $0x78] sm:$0xff] %v620_v60  ;;  %v642_v6 = vld [vmem:[#allocation2 + $0x8] sm:$0xff] (!%p1189_p5)  ;;  %v652_v18 = vld [vmem:[#allocation2 + $0x58] sm:$0xff] (!%p1189_p5)  ;;  %v658_v23 = vpack.c.bf16 (!%p1189_p5), %v644_v16, %v643_v15 }
 0x1ae   : > { %626 = vst [vmem:[#allocation2 + $0x28] sm:$0xff] %v610_v63  ;;  %634 = vst [vmem:[#allocation2 + $0x68] sm:$0xff] %v618_v0  ;;  %v657_v8 = vpack.c.bf16 (!%p1189_p5), %v642_v6, %v641_v5  ;;  %v650_v9 = vld [vmem:[#allocation2 + $0x48] sm:$0xff] (!%p1189_p5)  ;;  %v662_v24 = vpack.c.bf16 (!%p1189_p5), %v652_v18, %v651_v17 }
 0x1af   : > { %v661_v10 = vpack.c.bf16 %v650_v9, %v649_v7 }
 0x1b0   : > { %1368 = vmatprep.mubr.bf16.mxu0 %v657_v8 }
 0x1b1   : > { %1376 = vmatprep.mubr.bf16.mxu1 %v661_v10  ;;  %1369 = vmatmul.mubr.bf16.vlgmr.msra.gmra.mrb[0].mxu0 %v658_v23 }
 0x1b2   : > { %1377 = vmatmul.mubr.bf16.vlgmr.msra.gmra.mrb[0].mxu1 %v662_v24  ;;  %v647_v27 = vld [vmem:[#allocation2 + $0x30] sm:$0xff] }
 0x1b3   : > { %v645_v19 = vld [vmem:[#allocation2 + $0x20] sm:$0xff]  ;;  %v655_v29 = vld [vmem:[#allocation2 + $0x70] sm:$0xff] }
 0x1b4   : > { %v653_v21 = vld [vmem:[#allocation2 + $0x60] sm:$0xff]  ;;  %v648_v28 = vld [vmem:[#allocation2 + $0x38] sm:$0xff] }
 0x1b5   : > { %v646_v20 = vld [vmem:[#allocation2 + $0x28] sm:$0xff]  ;;  %v656_v30 = vld [vmem:[#allocation2 + $0x78] sm:$0xff]  ;;  %v660_v31 = vpack.c.bf16 %v648_v28, %v647_v27 }
 0x1b6   : > { %v654_v22 = vld [vmem:[#allocation2 + $0x68] sm:$0xff]  ;;  %v659_v25 = vpack.c.bf16 %v646_v20, %v645_v19  ;;  %v664_v32 = vpack.c.bf16 %v656_v30, %v655_v29 }
 0x1b7   : > { %v663_v26 = vpack.c.bf16 %v654_v22, %v653_v21 }
 0x1b8   : > { %1372 = vmatprep.mubr.bf16.mxu0 %v659_v25 }
 0x1b9   : > { %1380 = vmatprep.mubr.bf16.mxu1 %v663_v26  ;;  %1373 = vmatmul.mubr.bf16.gmra.mrb[4].mxu0 %v660_v31 }
 0x1ba   : > { %1381 = vmatmul.mubr.bf16.gmra.mrb[4].mxu1 %v664_v32 }
 0x284   : > { %v1370_v34 = vpop.f32.mrb[0].mxu0 }
 0x285   : > { %v1378_v35 = vpop.f32.mrb[0].mxu1  ;;  %v779_v36 = vadd.f32 %v1370_v34, %v2197_v33  ;;  %v770_v38 = vpop.f32.mrb[1].mxu0 }
 0x286   : > { %v811_v37 = vadd.f32 %v1378_v35, %v2197_v33  ;;  %v802_v39 = vpop.f32.mrb[1].mxu1  ;;  %v771_v41 = vadd.f32 %v2197_v33, %v770_v38  ;;  %v1371_v43 = vpop.f32.mrb[2].mxu0 }
 0x287   : > { %v803_v42 = vadd.f32 %v2197_v33, %v802_v39  ;;  %v1379_v44 = vpop.f32.mrb[2].mxu1  ;;  %v835_v45 = vmax.f32 %v779_v36, 0.0  ;;  %v782_v47 = vadd.f32 %v1371_v43, %v2197_v33  ;;  %v773_v49 = vpop.f32.mrb[3].mxu0 }
 0x288   : > { %v843_v46 = vmax.f32 %v811_v37, 0.0  ;;  %v814_v48 = vadd.f32 %v1379_v44, %v2197_v33  ;;  %v805_v50 = vpop.f32.mrb[3].mxu1  ;;  %v833_v52 = vmax.f32 %v771_v41, 0.0  ;;  %v774_v54 = vadd.f32 %v2197_v33, %v773_v49 }
 0x289   : > { %v841_v53 = vmax.f32 %v803_v42, 0.0  ;;  %v806_v55 = vadd.f32 %v2197_v33, %v805_v50  ;;  %v858_v56 = vmul.f32 %v2204_v40, %v835_v45  ;;  %v836_v58 = vmax.f32 %v782_v47, 0.0 }
 0x28a   : > { %v866_v57 = vmul.f32 %v2204_v40, %v843_v46  ;;  %v844_v59 = vmax.f32 %v814_v48, 0.0  ;;  %v856_v60 = vmul.f32 %v2204_v40, %v833_v52  ;;  %v834_v62 = vmax.f32 %v774_v54, 0.0 }
 0x28b   : > { %v864_v61 = vmul.f32 %v2204_v40, %v841_v53  ;;  %v842_v63 = vmax.f32 %v806_v55, 0.0  ;;  %v881_v0 = vadd.f32 %v2213_v51, %v858_v56  ;;  %v859_v2 = vmul.f32 %v2204_v40, %v836_v58 }
 0x28c   : > { %v889_v1 = vadd.f32 %v2213_v51, %v866_v57  ;;  %v867_v3 = vmul.f32 %v2204_v40, %v844_v59  ;;  %v879_v4 = vadd.f32 %v2213_v51, %v856_v60  ;;  %v857_v6 = vmul.f32 %v2204_v40, %v834_v62  ;;  %v1374_v8 = vpop.f32.mrb[4].mxu0 }
 0x28d   : > { %v887_v5 = vadd.f32 %v2213_v51, %v864_v61  ;;  %v865_v7 = vmul.f32 %v2204_v40, %v842_v63  ;;  %v1382_v9 = vpop.f32.mrb[4].mxu1  ;;  %vm897_vm0 = vcmp.gt.f32.partialorder %v881_v0, 0.0  ;;  %v913_v10 = vmul.f32 0.01, %v881_v0  ;;  %v786_v18 = vpop.f32.mrb[5].mxu0 }
 0x28e   : > { %vm905_vm1 = vcmp.gt.f32.partialorder %v889_v1, 0.0  ;;  %v921_v11 = vmul.f32 0.01, %v889_v1  ;;  %vm895_vm2 = vcmp.gt.f32.partialorder %v879_v4, 0.0  ;;  %v911_v12 = vmul.f32 0.01, %v879_v4 }
 0x28f   : > { %vm903_vm3 = vcmp.gt.f32.partialorder %v887_v5, 0.0  ;;  %v919_v13 = vmul.f32 0.01, %v887_v5  ;;  %v929_v14 = vsel %vm897_vm0, %v881_v0, %v913_v10  ;;  %v882_v16 = vadd.f32 %v2213_v51, %v859_v2  ;;  %v818_v19 = vpop.f32.mrb[5].mxu1  ;;  %v1375_v24 = vpop.f32.mrb[6].mxu0 }
 0x290   : > { %v937_v15 = vsel %vm905_vm1, %v889_v1, %v921_v11  ;;  %v890_v17 = vadd.f32 %v2213_v51, %v867_v3  ;;  %v927_v20 = vsel %vm895_vm2, %v879_v4, %v911_v12  ;;  %v880_v22 = vadd.f32 %v2213_v51, %v857_v6  ;;  %v1383_v25 = vpop.f32.mrb[6].mxu1  ;;  %v789_v35 = vpop.f32.mrb[7].mxu0 }
 0x291   : > { %v935_v21 = vsel %vm903_vm3, %v887_v5, %v919_v13  ;;  %v888_v23 = vadd.f32 %v2213_v51, %v865_v7  ;;  %vm898_vm4 = vcmp.gt.f32.partialorder %v882_v16, 0.0  ;;  %v914_v26 = vmul.f32 0.01, %v882_v16  ;;  %v821_v36 = vpop.f32.mrb[7].mxu1 }
 0x292   : > { %vm906_vm5 = vcmp.gt.f32.partialorder %v890_v17, 0.0  ;;  %v922_v27 = vmul.f32 0.01, %v890_v17  ;;  %vm896_vm6 = vcmp.gt.f32.partialorder %v880_v22, 0.0  ;;  %v912_v28 = vmul.f32 0.01, %v880_v22 }
 0x293   : > { %vm904_vm7 = vcmp.gt.f32.partialorder %v888_v23, 0.0  ;;  %v920_v29 = vmul.f32 0.01, %v888_v23  ;;  %v930_v30 = vsel %vm898_vm4, %v882_v16, %v914_v26  ;;  %v795_v32 = vadd.f32 %v1374_v8, %v2197_v33 }
 0x294   : > { %v938_v31 = vsel %vm906_vm5, %v890_v17, %v922_v27  ;;  %v827_v34 = vadd.f32 %v1382_v9, %v2197_v33  ;;  %v1249_v37 = vpack.c.bf16 %v930_v30, %v929_v14  ;;  %v928_v39 = vsel %vm896_vm6, %v880_v22, %v912_v28 }
 0x295   : > { %v1269_v38 = vpack.c.bf16 %v938_v31, %v937_v15  ;;  %v936_v41 = vsel %vm904_vm7, %v888_v23, %v920_v29  ;;  %v1244_v42 = vpack.c.bf16 %v928_v39, %v927_v20  ;;  %v839_v44 = vmax.f32 %v795_v32, 0.0 }
 0x296   : > { %v1264_v43 = vpack.c.bf16 %v936_v41, %v935_v21  ;;  %v847_v45 = vmax.f32 %v827_v34, 0.0  ;;  %1281 = vst [vmem:[%s2174_s13 + $0x8] sm:$0xff] %v1249_v37   ;;  %v787_v46 = vadd.f32 %v2197_v33, %v786_v18  ;;  %v819_v47 = vadd.f32 %v2197_v33, %v818_v19 }
 0x297   : > { %1285 = vst [vmem:[%s2174_s13 + $0x28] sm:$0xff] %v1269_v38   ;;  %v798_v48 = vadd.f32 %v1375_v24, %v2197_v33  ;;  %v830_v49 = vadd.f32 %v1383_v25, %v2197_v33  ;;  %1245 = vst [vmem:[%s2174_s13] sm:$0xff] %v1244_v42   ;;  %v862_v50 = vmul.f32 %v2204_v40, %v839_v44 }
 0x298   : > { %1284 = vst [vmem:[%s2174_s13 + $0x20] sm:$0xff] %v1264_v43   ;;  %v870_v52 = vmul.f32 %v2204_v40, %v847_v45  ;;  %v790_v53 = vadd.f32 %v2197_v33, %v789_v35  ;;  %v822_v54 = vadd.f32 %v2197_v33, %v821_v36  ;;  %v837_v55 = vmax.f32 %v787_v46, 0.0 }
 0x299   : > { %v845_v56 = vmax.f32 %v819_v47, 0.0  ;;  %v840_v57 = vmax.f32 %v798_v48, 0.0  ;;  %v848_v58 = vmax.f32 %v830_v49, 0.0  ;;  %v885_v59 = vadd.f32 %v2213_v51, %v862_v50 }
 0x29a   : > { %v893_v60 = vadd.f32 %v2213_v51, %v870_v52  ;;  %v838_v61 = vmax.f32 %v790_v53, 0.0  ;;  %v846_v62 = vmax.f32 %v822_v54, 0.0  ;;  %v860_v63 = vmul.f32 %v2204_v40, %v837_v55 }
 0x29b   : > { %v868_v0 = vmul.f32 %v2204_v40, %v845_v56  ;;  %v863_v1 = vmul.f32 %v2204_v40, %v840_v57  ;;  %v871_v2 = vmul.f32 %v2204_v40, %v848_v58  ;;  %vm901_vm8 = vcmp.gt.f32.partialorder %v885_v59, 0.0 }
 0x29c   : > { %v917_v33 = vmul.f32 0.01, %v885_v59  ;;  %vm909_vm9 = vcmp.gt.f32.partialorder %v893_v60, 0.0  ;;  %v925_v3 = vmul.f32 0.01, %v893_v60  ;;  %v883_v4 = vadd.f32 %v2213_v51, %v860_v63 }
 0x29d   : > { %v886_v5 = vadd.f32 %v2213_v51, %v863_v1  ;;  %v894_v6 = vadd.f32 %v2213_v51, %v871_v2  ;;  %v891_v7 = vadd.f32 %v2213_v51, %v868_v0  ;;  %v861_v8 = vmul.f32 %v2204_v40, %v838_v61 }
 0x29e   : > { %v869_v9 = vmul.f32 %v2204_v40, %v846_v62  ;;  %v933_v10 = vsel %vm901_vm8, %v885_v59, %v917_v33  ;;  %v941_v11 = vsel %vm909_vm9, %v893_v60, %v925_v3  ;;  %vm899_vm12 = vcmp.gt.f32.partialorder %v883_v4, 0.0 }
 0x29f   : > { %vm902_vm10 = vcmp.gt.f32.partialorder %v886_v5, 0.0  ;;  %v918_v12 = vmul.f32 0.01, %v886_v5  ;;  %vm910_vm11 = vcmp.gt.f32.partialorder %v894_v6, 0.0  ;;  %v926_v13 = vmul.f32 0.01, %v894_v6 }
 0x2a0   : > { %v915_v14 = vmul.f32 0.01, %v883_v4  ;;  %v884_v15 = vadd.f32 %v2213_v51, %v861_v8  ;;  %v892_v16 = vadd.f32 %v2213_v51, %v869_v9  ;;  %vm907_vm13 = vcmp.gt.f32.partialorder %v891_v7, 0.0 }
 0x2a1   : > { %v923_v17 = vmul.f32 0.01, %v891_v7  ;;  %v934_v18 = vsel %vm902_vm10, %v886_v5, %v918_v12  ;;  %v942_v19 = vsel %vm910_vm11, %v894_v6, %v926_v13 }
 0x2a2   : > { %v1259_v40 = vpack.c.bf16 %v934_v18, %v933_v10  ;;  %v1279_v20 = vpack.c.bf16 %v942_v19, %v941_v11  ;;  %vm900_vm14 = vcmp.gt.f32.partialorder %v884_v15, 0.0  ;;  %v916_v21 = vmul.f32 0.01, %v884_v15 }
 0x2a3   : > { %vm908_vm15 = vcmp.gt.f32.partialorder %v892_v16, 0.0  ;;  %v924_v22 = vmul.f32 0.01, %v892_v16  ;;  %v931_v23 = vsel %vm899_vm12, %v883_v4, %v915_v14  ;;  %v939_v25 = vsel %vm907_vm13, %v891_v7, %v923_v17 }
 0x2a4   : > { %1283 = vst [vmem:[%s2174_s13 + $0x18] sm:$0xff] %v1259_v40   ;;  %1287 = vst [vmem:[%s2174_s13 + $0x38] sm:$0xff] %v1279_v20   ;;  %v932_v24 = vsel %vm900_vm14, %v884_v15, %v916_v21 }
 0x2a5   : > { %v1254_v26 = vpack.c.bf16 %v932_v24, %v931_v23  ;;  %v940_v27 = vsel %vm908_vm15, %v892_v16, %v924_v22 }
 0x2a6   : > { %v1274_v51 = vpack.c.bf16 %v940_v27, %v939_v25 }
 0x2a7   : > { %1282 = vst [vmem:[%s2174_s13 + $0x10] sm:$0xff] %v1254_v26  }
 0x2a8   : > { %1286 = vst [vmem:[%s2174_s13 + $0x30] sm:$0xff] %v1274_v51  }
 0x2a9 PF: > { %s2424_s18 = sld [smem:[#allocation17_spill]]  ;;  %s2426_s14 = sld [smem:[#allocation20_spill]] }
 0x2aa   : > { %s2427_s22 = sld [smem:[#allocation27_spill]]  ;;  %s1037_s19 = sshll.u32 %s2174_s13, 4  ;;  %s2272_s19 = int_to_ptr.vmem [resolvable:$true] %s1037_s19 }
 0x2ab   : > { %s2276_s30 = scalar_lea.sflag [#allocation5], %s337_s24  ;;  %s1676_s20 = scalar_lea.vmem %s2272_s19, 1024 }
 0x2ac   : > { %p1677_p2 = scmp.ne.s32.totalorder %s2272_s19, %s1676_s20  ;;  %s1839_s3 = smov [#allocation9]  }
 0x2ad   : > { %s1680_s4 = sshll.u32 %s1839_s3, 4  ;;  %s1681_s4 = int_to_ptr.vmem [resolvable:$false] %s1680_s4 }
 0x2ae   : > { %s1682_s15 = scalar_lea.vmem %s1681_s4, 2048  ;;  %p1683_p4 = scmp.lt.s32.totalorder %s2272_s19, %s1681_s4 }
 0x2af   : > { %s1240_s5 = sshll.u32 %s2424_s18, 10  ;;  %p2429_p10 = scmp.ne.s32.totalorder %s2426_s14, 0 }
 0x2b0   : > { %s2428_s6 = smov %s2427_s22  ;;  %s2269_s12 = scalar_lea.hbm %s2427_s22, %s1240_s5 }
 0x2b1   : > { %p1678_p0 = pnand %p1677_p2, %p2429_p10  ;;  %p1684_p8 = scmp.lt.s32.totalorder %s1682_s15, %s1676_s20 }
 0x2b3   : > { %p1679_p11 = pneg %p1678_p0  ;;  %p1685_p12 = por %p1684_p8, %p1683_p4 }
 0x2b5   : > { %p1686_p13 = pnand %p1685_p12, %p1679_p11 }
 0x2b7   : > { %1689 = shalt.err (!%p1686_p13)
}
 0x2b8   : > { %s1690_s24 = scalar_lea.hbm %s2269_s12, 1024  ;;  %s1694_s16 = scalar_lea.hbm %s2428_s6, 2048 }
 0x2b9   : > { %p1691_p6 = scmp.ne.s32.totalorder %s2269_s12, %s1690_s24  ;;  %p1695_p3 = scmp.lt.u32.totalorder %s2269_s12, %s2428_s6 }
 0x2ba   : > { %p1696_p9 = scmp.lt.u32.totalorder %s1694_s16, %s1690_s24  ;;  %p1698_p2 = scmp.lt.u32.totalorder %s1690_s24, %s2269_s12 }
 0x2bb   : > { %p1692_p7 = pnand %p1691_p6, %p2429_p10 }
 0x2bc   : > { %p1697_p5 = por %p1696_p9, %p1695_p3 }
 0x2bd   : > { %p1693_p1 = pneg %p1692_p7 }
 0x2be   : > { %p1699_p0 = por %p1698_p2, %p1697_p5 }
 0x2c0   : > { %p1700_p11 = pnand %p1699_p0, %p1693_p1 }
 0x2c2   : > { %1703 = shalt.err (!%p1700_p11)
}
 0x2c3   : > { %s1840_s21 = smov 64   ;;  %s1841_s22 = smov 4  }
 0x2c4   : > { %1424 = dma.vmem_to_hbm [thread:$0]  (%p2429_p10), %s2272_s19, 1024, %s2269_s12, %s2276_s30, %s1840_s21, %s1840_s21, %s1841_s22  }
 0x2c5 PF: > { %s2430_s20 = sld [smem:[#allocation14_spill]]  ;;  %s2431_s3 = sld [smem:[#allocation21_spill]] }
 0x2c6   : > { %p1444_p4 = scmp.ge.s32.totalorder %s1830_s10, 2 }
 0x2cb   : > { %s1052_s4 = sand.u32 1, %s2430_s20   ;;  %p2432_p8 = scmp.ne.s32.totalorder %s2431_s3, 0 }
 0x2cc   : > { %s1053_s15 = scalar_lea.sflag [#allocation5], %s1052_s4 }
 0x2cd   : > { %p1438_p12 = pnand %p1444_p4, %p2432_p8 }
 0x2cf   : > { %1773 = dma.done.wait (!%p1438_p12), %s1053_s15, 1024  }
 0x2d0   : > { %1775 = vsyncadd (!%p1438_p12), %s1053_s15, 4294966272  ;;  %s25_s10 = sadd.s32 1, %s1830_s10   ;;  %s2434_s21 = sld [smem:[#allocation15_spill]] }
 0x2d1   : > { %p2305_p13 = scmp.ge.s32.totalorder %s25_s10, 6   ;;  %s2435_s14 = sld [smem:[#allocation22_spill]] }
 0x2d2   : > { %s2436_s12 = smov %s2455_s27  ;;  %s2438_s22 = smov %s1786_s23 }
 0x2d3   : > { %s2439_s23 = smov %s2040_s17  ;;  %s2440_s24 = smov %s1794_s25 }
 0x2d4   : > { %s2441_s25 = smov %s1798_s26  ;;  %s2442_s26 = smov %s2098_s2 }
 0x2d5   : > { %s2443_s27 = smov %s1806_s28  ;;  %s2444_s28 = smov %s1810_s29 }
 0x2d6   : > { %s2445_s29 = smov %s2043_s7  ;;  %s2446_s30 = smov %s1822_s8 }
 0x2d7   : > { %s2447_s7 = smov %s1826_s9  ;;  %s2448_s8 = smov %s2435_s14 }
 0x2d8   : > { %s2449_s9 = smov %s2436_s12  ;;  %24 = sbr.rel (!%p2305_p13) target bundleno = 18 (0x12), region = 114 }
 0x2df   :  { %1058 = vsyncpa [#allocation4], 1 }
 0x2e0   :  { %1060 = vsyncpa [#allocation4 + $0x1], 1 }
 0x2e1   :  { %1061 = vsyncpa [#allocation7], 1 }
 0x2e2   :  { %1063 = vsyncpa [#allocation7 + $0x1], 1 }
 0x2e3   :  { %1064 = vsyncpa [#allocation5], 1 }
 0x2e4   :  { %1066 = vsyncpa [#allocation5 + $0x1], 1 }

</bundles_post_ra>
